<compile_context>
chip_gen: v7x
topology: tpu7x:2x2x1
jax: 0.10.0
libtpu: 0.0.40
codegen_flags: <defaults>
</compile_context>

<pallas_src>
import jax
import jax.numpy as jnp
from jax.experimental import pallas as pl
from jax.experimental.pallas import tpu as pltpu


def _fc_kernel(x_ref, w_ref, b_ref, o_ref):
    # One M-tile: y = tanh(x @ W + b).  x_ref: (TM, Dp), w_ref: (Dp, Dp),
    # b_ref: (1, Dp), o_ref: (TM, Dp)  -- all lane-dense (last dim multiple of 128).
    y = jnp.dot(x_ref[...], w_ref[...], preferred_element_type=jnp.float32)
    o_ref[...] = jnp.tanh(y + b_ref[...]).astype(o_ref.dtype)


def _round_up(x, m):
    return (x + m - 1) // m * m


def fc_forward(x, weight, bias, *, tm=None):
    """tanh(x @ weight.T + bias) — PyTorch `fc.forward` semantics.

    x:      (..., D)
    weight: (D, D)  PyTorch nn.Linear layout (out_features, in_features)
    bias:   (D,)
    """
    orig_shape = x.shape
    D = orig_shape[-1]
    x2 = x.reshape(-1, D).astype(jnp.float32)
    M = x2.shape[0]

    # Lane-dense padding of the feature dim; sublane-friendly padding of M.
    Dp = _round_up(D, 128)
    if tm is None:
        # Big tiles (the kernel is otherwise overhead-bound), but keep >=2 grid
        # steps when the problem allows so v7x's two TensorCores both get work.
        if M >= 512:
            tm = 256
        elif M >= 256:
            tm = 128
        else:
            tm = _round_up(M, 8)
    Mp = _round_up(M, tm)

    x_p = jnp.zeros((Mp, Dp), jnp.float32).at[:M, :D].set(x2)
    # (out, in) -> (in, out), zero-pad to (Dp, Dp); padded K rows see zero inputs.
    w_p = jnp.zeros((Dp, Dp), jnp.float32).at[:D, :D].set(weight.T.astype(jnp.float32))
    b_p = jnp.zeros((1, Dp), jnp.float32).at[0, :D].set(bias.astype(jnp.float32))

    grid = (Mp // tm,)
    out = pl.pallas_call(
        _fc_kernel,
        out_shape=jax.ShapeDtypeStruct((Mp, Dp), jnp.float32),
        grid_spec=pltpu.PrefetchScalarGridSpec(
            num_scalar_prefetch=0,
            grid=grid,
            in_specs=[
                pl.BlockSpec((tm, Dp), lambda i: (i, 0)),   # activations tile
                pl.BlockSpec((Dp, Dp), lambda i: (0, 0)),   # whole weight in VMEM
                pl.BlockSpec((1, Dp), lambda i: (0, 0)),    # bias row
            ],
            out_specs=pl.BlockSpec((tm, Dp), lambda i: (i, 0)),
        ),
        compiler_params=pltpu.CompilerParams(
            dimension_semantics=("parallel",)),
    )(x_p, w_p, b_p)

    return out[:M, :D].reshape(orig_shape)


def reference(x, weight, bias):
    """Pure-JAX mirror of the PyTorch forward: tanh(Linear(x))."""
    return jnp.tanh(x @ weight.T + bias)


if __name__ == "__main__":
    B, S, D = 2, 128, 128  # small shapes; dim = 128 (nn.Linear(dim, dim))
    key = jax.random.PRNGKey(0)
    kx, kw, kb = jax.random.split(key, 3)

    x = jax.random.normal(kx, (B, S, D), dtype=jnp.float32)
    weight = (0.1 * jax.random.normal(kw, (D, D))).astype(jnp.float32)
    bias = (0.1 * jax.random.normal(kb, (D,))).astype(jnp.float32)

    y = fc_forward(x, weight, bias)
    y = jax.block_until_ready(y)

    y_ref = reference(x, weight, bias)
    assert y.shape == x.shape
    assert jnp.allclose(y, y_ref, atol=1e-4, rtol=1e-4), "mismatch vs reference"

    print("KERNEL_OK")
</pallas_src>

<mosaic_0001>
module attributes {stable_mosaic.version = 11 : i64} {
  func.func @_fc_kernel(%arg0: i32, %arg1: memref<128x128xf32, #tpu.memory_space<vmem>>, %arg2: memref<128x128xf32, #tpu.memory_space<vmem>>, %arg3: memref<1x128xf32, #tpu.memory_space<vmem>>, %arg4: memref<128x128xf32, #tpu.memory_space<vmem>>) attributes {dimension_semantics = [#tpu.dimension_semantics<parallel>], iteration_bounds = array<i64: 2>, scalar_prefetch = 0 : i64, scratch_operands = 0 : i64, tpu.core_type = #tpu.core_type<tc>, window_params = [{transform_indices = @transform_0, window_bounds = array<i64: 128, 128>}, {pipeline_mode = #tpu.pipeline_mode<synchronous>, transform_indices = @transform_1, window_bounds = array<i64: 128, 128>}, {pipeline_mode = #tpu.pipeline_mode<synchronous>, transform_indices = @transform_2, window_bounds = array<i64: 1, 128>}, {transform_indices = @transform_3, window_bounds = array<i64: 128, 128>}]} {
    %c0 = arith.constant 0 : index
    %c0_0 = arith.constant 0 : index
    %0 = vector.load %arg1[%c0, %c0_0] : memref<128x128xf32, #tpu.memory_space<vmem>>, vector<128x128xf32>
    %c0_1 = arith.constant 0 : index
    %c0_2 = arith.constant 0 : index
    %1 = vector.load %arg2[%c0_1, %c0_2] : memref<128x128xf32, #tpu.memory_space<vmem>>, vector<128x128xf32>
    %cst = arith.constant dense<0.000000e+00> : vector<128x128xf32>
    %2 = tpu.matmul %0, %1, %cst {dimension_numbers = #tpu.dot_dimension_numbers<[1], [0], [0], [1], [0, 0, 1, 1], [], []>} : vector<128x128xf32>, vector<128x128xf32>, vector<128x128xf32> -> vector<128x128xf32>
    %c0_3 = arith.constant 0 : index
    %c0_4 = arith.constant 0 : index
    %3 = vector.load %arg3[%c0_3, %c0_4] : memref<1x128xf32, #tpu.memory_space<vmem>>, vector<1x128xf32>
    %4 = vector.broadcast %3 : vector<1x128xf32> to vector<128x128xf32>
    %5 = arith.addf %2, %4 : vector<128x128xf32>
    %6 = math.tanh %5 : vector<128x128xf32>
    %c0_5 = arith.constant 0 : index
    %c0_6 = arith.constant 0 : index
    %7 = vector.load %arg4[%c0_5, %c0_6] : memref<128x128xf32, #tpu.memory_space<vmem>>, vector<128x128xf32>
    tpu.vector_store %arg4[%c0_5, %c0_6], %6 {strides = array<i32>} : memref<128x128xf32, #tpu.memory_space<vmem>>, vector<128x128xf32>,
    return
  }
  func.func @transform_0(%arg0: i32) -> (i32, i32) {
    %c0_i32 = arith.constant 0 : i32
    %c0_i32_0 = arith.constant 0 : i32
    return %arg0, %c0_i32 : i32, i32
  }
  func.func @transform_1(%arg0: i32) -> (i32, i32) {
    %c0_i32 = arith.constant 0 : i32
    %c0_i32_0 = arith.constant 0 : i32
    %c0_i32_1 = arith.constant 0 : i32
    return %c0_i32, %c0_i32_0 : i32, i32
  }
  func.func @transform_2(%arg0: i32) -> (i32, i32) {
    %c0_i32 = arith.constant 0 : i32
    %c0_i32_0 = arith.constant 0 : i32
    %c0_i32_1 = arith.constant 0 : i32
    return %c0_i32, %c0_i32_0 : i32, i32
  }
  func.func @transform_3(%arg0: i32) -> (i32, i32) {
    %c0_i32 = arith.constant 0 : i32
    %c0_i32_0 = arith.constant 0 : i32
    return %arg0, %c0_i32 : i32, i32
  }
}

</mosaic_0001>

<bundles_post_ra>
// kernel: tpu_custom_call.1
= control target key start
LH: loop header
LB: loop body
LE: loop exit
PB: predicated region body
PF: predicated region fallthrough
CT: control target
= control target key end

     0   :  { %8 = vsyncpa [#allocation3], 0  ;;  %s1175_s0 = inlined_call_operand.hbm [shape: f32[256,128], index: 0, kind: input, shape index: {}]   ;;  %s1176_s1 = inlined_call_operand.hbm [shape: f32[128,128], index: 1, kind: input, shape index: {}]   ;;  %s1177_s2 = inlined_call_operand.vmem [shape: f32[1,128], index: 2, kind: input, shape index: {}]   ;;  %s1178_s3 = inlined_call_operand.hbm [shape: f32[256,128], index: 3, kind: output, shape index: {}]  }
   0x1   :  { %10 = vsyncpa [#allocation3 + $0x1], 0 }
   0x2   :  { %11 = vsyncpa [#allocation6], 0 }
   0x3   :  { %12 = vsyncpa [#allocation4], 0 }
   0x4   :  { %14 = vsyncpa [#allocation4 + $0x1], 0  ;;  %s924_s12 = smov 0   ;;  %s926_s13 = smov 0  }
   0x5   :  { %s928_s14 = smov 0   ;;  %s930_s15 = smov 0  }
   0x6 LB: > { %s945_s16 = sadd.s32 4294967295, %s895_s15   ;;  %s519_s17 = sadd.s32 4294967294, %s895_s15   ;;  %s895_s15 = sphi %s930_s15, %s1198_s15   ;;  %s891_s14 = sphi %s928_s14, %s1197_s14   ;;  %s887_s13 = sphi %s926_s13, %s1196_s13   ;;  %s883_s12 = sphi %s924_s12, %s1195_s12  }
   0x7   : > { %p40_p0 = scmp.ne.s32.totalorder %s887_s13, %s883_s12  ;;  %p1179_p1 = scmp.eq.s32.totalorder %s945_s16, 0 }
   0x8   : > { %p112_p3 = scmp.eq.s32.totalorder %s519_s17, 1  ;;  %p520_p5 = scmp.ge.s32.totalorder %s895_s15, 1 }
   0x9   : > { %p954_p4 = por %p1179_p1, %p40_p0  ;;  %p119_p7 = scmp.lt.s32.totalorder %s895_s15, 3 }
   0xa   : > { %p959_p6 = por %p112_p3, %p40_p0  ;;  %s897_s21 = smov [#allocation5]  }
   0xb   : > { %s1182_s18 = scalar_select %p954_p4, 1, 0 }
   0xc   : > { %s1183_s19 = scalar_select %p959_p6, 1, 0 }
   0xd   : > { %p964_p8 = pnand %p520_p5, %p119_p7  ;;  %s131_s22 = sshll.u32 %s897_s21, 4  ;;  %s968_s22 = int_to_ptr.vmem [resolvable:$true] %s131_s22 }
   0xe   : > { %s980_s24 = sadd.s32 1, %s895_s15   ;;  %s27_s25 = sadd.s32 1, %s891_s14 }
   0xf   : > { %s1184_s20 = scalar_select %p964_p8, 1, 0 }
  0x10   : > { %p682_p9 = pneg %p964_p8  ;;  %s24_s26 = ssub.s32 %s895_s15, %s980_s24 }
  0x11   : > { %s767_s29 = scalar_lea.hbm %s1176_s1, 2048 }
  0x12   : > { %p975_p11 = pnand %p682_p9, %p1179_p1  ;;  %p768_p12 = scmp.ne.s32.totalorder %s1176_s1, %s767_s29 }
  0x13   : > { %p774_p5 = scmp.lt.u32.totalorder %s767_s29, %s1176_s1 }
  0x14   : > { %p769_p13 = pneg %p975_p11 }
  0x16   : > { %p770_p0 = pnand %p769_p13, %p768_p12 }
  0x18   : > { %p771_p3 = pneg %p770_p0 }
  0x1a   : > { %p776_p7 = pnand %p774_p5, %p771_p3 }
  0x1c   : > { %779 = shalt.err (!%p776_p7)
}
  0x1d   : > { %s780_s7 = scalar_lea.vmem %s968_s22, 2048  ;;  %p788_p2 = scmp.lt.s32.totalorder %s968_s22, %s968_s22 }
  0x1e   : > { %p781_p9 = scmp.ne.s32.totalorder %s968_s22, %s780_s7  ;;  %p789_p6 = scmp.lt.s32.totalorder %s780_s7, %s780_s7 }
  0x20   : > { %p783_p10 = pnand %p781_p9, %p769_p13  ;;  %p790_p4 = por %p789_p6, %p788_p2 }
  0x22   : > { %p784_p1 = pneg %p783_p10 }
  0x24   : > { %p791_p8 = pnand %p790_p4, %p784_p1 }
  0x26   : > { %794 = shalt.err (!%p791_p8)
}
  0x27   : > { %s898_s8 = smov 128   ;;  %s899_s9 = smov 8  }
  0x28   : > { %685 = dma.hbm_to_vmem [thread:$0]  (!%p975_p11), %s1176_s1, 2048, %s968_s22, [#allocation6], %s898_s8, %s898_s8, %s899_s9  }
  0x29   : > { %p25_p1 = scmp.eq.s32.totalorder %s24_s26, 0  ;;  %p34_p2 = scmp.ne.s32.totalorder %s891_s14, %s887_s13 }
  0x2a   : > { %p35_p4 = scmp.eq.s32.totalorder %s895_s15, 0  ;;  %p695_p6 = scmp.lt.s32.totalorder %s895_s15, 2 }
  0x2b   : > { %s1014_s17 = scalar_select %p25_p1, %s891_s14, %s27_s25  }
  0x2c   : > { %p36_p8 = por %p35_p4, %p34_p2  ;;  %p1186_p10 = scmp.eq.s32.totalorder %s945_s16, 1 }
  0x2d   : > { %s148_s23 = sand.u32 1, %s891_s14   ;;  %s536_s27 = sshll.u32 %s895_s15, 11 }
  0x2e   : > { %p1018_p12 = por %p1186_p10, %p34_p2  ;;  %s523_s28 = sshll.u32 %s148_s23, 7 }
  0x2f   : > { %s1027_s4 = scalar_lea.hbm %s1175_s0, %s536_s27  ;;  %s152_s22 = scalar_lea.vmem [#allocation2], %s523_s28 }
  0x30   : > { %s159_s25 = sshll.u32 %s152_s22, 4  ;;  %p1029_p11 = pnand %p695_p6, %p36_p8  ;;  %s1033_s25 = int_to_ptr.vmem [resolvable:$true] %s159_s25 }
  0x31   : > { %s1035_s5 = scalar_lea.sflag [#allocation3], %s148_s23  ;;  %s795_s6 = scalar_lea.hbm %s1027_s4, 2048 }
  0x32   : > { %p796_p13 = scmp.ne.s32.totalorder %s1027_s4, %s795_s6  ;;  %p797_p0 = pneg %p1029_p11 }
  0x33   : > { %s800_s11 = scalar_lea.hbm %s1175_s0, 4096  ;;  %p801_p7 = scmp.lt.u32.totalorder %s1027_s4, %s1175_s0 }
  0x34   : > { %p798_p3 = pnand %p797_p0, %p796_p13  ;;  %p802_p9 = scmp.lt.u32.totalorder %s800_s11, %s795_s6 }
  0x35   : > { %p804_p2 = scmp.lt.u32.totalorder %s795_s6, %s1027_s4 }
  0x36   : > { %p799_p5 = pneg %p798_p3  ;;  %p803_p1 = por %p802_p9, %p801_p7 }
  0x38   : > { %p805_p4 = por %p804_p2, %p803_p1 }
  0x3a   : > { %p806_p6 = pnand %p805_p4, %p799_p5 }
  0x3c   : > { %809 = shalt.err (!%p806_p6)
}
  0x3d   : > { %s810_s23 = scalar_lea.vmem %s1033_s25, 2048  ;;  %s900_s29 = smov [#allocation2]  }
  0x3e   : > { %p811_p8 = scmp.ne.s32.totalorder %s1033_s25, %s810_s23  ;;  %s815_s30 = sshll.u32 %s900_s29, 4  ;;  %s816_s30 = int_to_ptr.vmem [resolvable:$false] %s815_s30 }
  0x3f   : > { %s817_s22 = scalar_lea.vmem %s816_s30, 4096  ;;  %p818_p3 = scmp.lt.s32.totalorder %s1033_s25, %s816_s30 }
  0x40   : > { %p813_p10 = pnand %p811_p8, %p797_p0  ;;  %p819_p7 = scmp.lt.s32.totalorder %s817_s22, %s810_s23 }
  0x42   : > { %p814_p13 = pneg %p813_p10  ;;  %p820_p9 = por %p819_p7, %p818_p3 }
  0x44   : > { %p821_p1 = pnand %p820_p9, %p814_p13 }
  0x46   : > { %824 = shalt.err (!%p821_p1)
}
  0x47   : > { %689 = dma.hbm_to_vmem [thread:$0]  (!%p1029_p11), %s1027_s4, 2048, %s1033_s25, %s1035_s5, %s898_s8, %s898_s8, %s899_s9  }
  0x48   : > { %p1189_p0 = scmp.ne.s32.totalorder %s1184_s20, 0 }
  0x49   : > { %s1069_s6 = sand.u32 (!%p1189_p0), 1, %s887_s13   ;;  %p1190_p5 = scmp.ne.s32.totalorder (!%p1189_p0), %s1182_s18, 0 }
  0x4a   : > { %171 = sbr.rel (%p1189_p0) target bundleno = 375 (0x177), region = 32  ;;  %s527_s7 = sshll.u32 (!%p1189_p0), %s1069_s6, 7 }
  0x4b   : > { %s174_s10 = scalar_lea.sflag (!%p1189_p0), [#allocation3], %s1069_s6  ;;  %s1075_s26 = scalar_lea.vmem (!%p1189_p0), [#allocation2], %s527_s7 }
  0x51   : > { %870 = dma.done.wait (%p1190_p5), %s174_s10, 2048  }
  0x52   : > { %872 = vsyncadd (%p1190_p5), %s174_s10, 4294965248  ;;  %p1191_p11 = scmp.eq.s32.totalorder %s945_s16, 0 }
  0x54   : > { %874 = dma.done.wait (%p1191_p11), [#allocation6], 2048   ;;  %p1192_p2 = pmov %p1191_p11 }
  0x55   : > { %v222_v0 = vld [vmem:[#allocation5] sm:$0xff]  ;;  %v223_v1 = vld [vmem:[#allocation5 + $0x8] sm:$0xff]  ;;  %v224_v2 = vld [vmem:[#allocation5 + $0x10] sm:$0xff]  ;;  %s1106_s8 = scalar_lea.vmem [#allocation7], %s527_s7  ;;  %s537_s9 = sshll.u32 %s945_s16, 11 }
  0x56   : > { %876 = vsyncadd (%p1192_p2), [#allocation6], 4294965248  ;;  %v626_v3 = vpack.c.bf16 %v223_v1, %v222_v0  ;;  %v225_v4 = vld [vmem:[#allocation5 + $0x18] sm:$0xff]  ;;  %v226_v6 = vld [vmem:[#allocation5 + $0x20] sm:$0xff]  ;;  %s436_s4 = sshll.u32 %s1106_s8, 4  ;;  %s1126_s11 = scalar_lea.hbm %s1178_s3, %s537_s9  ;;  %s1128_s4 = int_to_ptr.vmem [resolvable:$true] %s436_s4 }
  0x57   : > { %v630_v5 = vpack.c.bf16 %v225_v4, %v224_v2  ;;  %v227_v7 = vld [vmem:[#allocation5 + $0x28] sm:$0xff]  ;;  %v206_v9 = vld [vmem:[%s1075_s26] sm:$0xff]  ;;  %v228_v11 = vld [vmem:[#allocation5 + $0x30] sm:$0xff]  ;;  %s423_s16 = scalar_lea.sflag [#allocation4], %s1069_s6  ;;  %s825_s27 = scalar_lea.vmem %s1128_s4, 2048 }
  0x58   : > { %627 = vmatprep.subr.bf16.mxu0 %v626_v3  ;;  %658 = vmatprep.subr.bf16.mxu1 %v626_v3  ;;  %v634_v8 = vpack.c.bf16 %v227_v7, %v226_v6  ;;  %v214_v10 = vld [vmem:[%s1075_s26 + $0x40] sm:$0xff]  ;;  %v229_v12 = vld [vmem:[#allocation5 + $0x38] sm:$0xff]  ;;  %v231_v15 = vld [vmem:[#allocation5 + $0x48] sm:$0xff]  ;;  %p826_p4 = scmp.ne.s32.totalorder %s1128_s4, %s825_s27  ;;  %s901_s28 = smov [#allocation7]  }
  0x59   : > { %629 = vmatpush3.bf16.msra.mxu0 %v626_v3  ;;  %666 = vmatpush3.bf16.msra.mxu1 %v626_v3  ;;  %v638_v13 = vpack.c.bf16 %v229_v12, %v228_v11  ;;  %v230_v14 = vld [vmem:[#allocation5 + $0x40] sm:$0xff]  ;;  %v232_v17 = vld [vmem:[#allocation5 + $0x50] sm:$0xff]  ;;  %v233_v18 = vld [vmem:[#allocation5 + $0x58] sm:$0xff]  ;;  %s829_s23 = sshll.u32 %s901_s28, 4  ;;  %s830_s23 = int_to_ptr.vmem [resolvable:$false] %s829_s23 }
  0x5a   : > { %631 = vmatprep.subr.bf16.mxu0 %v630_v5  ;;  %659 = vmatprep.subr.bf16.mxu1 %v630_v5  ;;  %v642_v16 = vpack.c.bf16 %v231_v15, %v230_v14  ;;  %v646_v19 = vpack.c.bf16 %v233_v18, %v232_v17  ;;  %v234_v20 = vld [vmem:[#allocation5 + $0x60] sm:$0xff]  ;;  %v235_v21 = vld [vmem:[#allocation5 + $0x68] sm:$0xff]  ;;  %v236_v23 = vld [vmem:[#allocation5 + $0x70] sm:$0xff]  ;;  %p827_p6 = pnand %p826_p4, %p1018_p12  ;;  %s831_s29 = scalar_lea.vmem %s830_s23, 4096 }
  0x5b   : > { %602 = vmatprep.mubr.f32.mxu0 %v206_v9  ;;  %614 = vmatprep.mubr.f32.mxu1 %v214_v10  ;;  %v650_v22 = vpack.c.bf16 %v235_v21, %v234_v20  ;;  %v237_v24 = vld [vmem:[#allocation5 + $0x78] sm:$0xff]  ;;  %v207_v26 = vld [vmem:[%s1075_s26 + $0x8] sm:$0xff]  ;;  %v208_v28 = vld [vmem:[%s1075_s26 + $0x10] sm:$0xff]  ;;  %p832_p10 = scmp.lt.s32.totalorder %s1128_s4, %s830_s23  ;;  %p833_p13 = scmp.lt.s32.totalorder %s831_s29, %s825_s27 }
  0x5c   : > { %v654_v25 = vpack.c.bf16 %v237_v24, %v236_v23  ;;  %v215_v27 = vld [vmem:[%s1075_s26 + $0x48] sm:$0xff]  ;;  %v216_v29 = vld [vmem:[%s1075_s26 + $0x50] sm:$0xff]  ;;  %v209_v30 = vld [vmem:[%s1075_s26 + $0x18] sm:$0xff]  ;;  %p828_p8 = pneg %p827_p6 }
  0x5d   : > { %633 = vmatpush3.bf16.msra.mxu0 %v630_v5  ;;  %667 = vmatpush3.bf16.msra.mxu1 %v630_v5  ;;  %v217_v31 = vld [vmem:[%s1075_s26 + $0x58] sm:$0xff]  ;;  %v210_v32 = vld [vmem:[%s1075_s26 + $0x20] sm:$0xff]  ;;  %v211_v34 = vld [vmem:[%s1075_s26 + $0x28] sm:$0xff]  ;;  %p834_p3 = por %p833_p13, %p832_p10 }
  0x5e   : > { %635 = vmatprep.subr.bf16.mxu0 %v634_v8  ;;  %660 = vmatprep.subr.bf16.mxu1 %v634_v8  ;;  %v218_v33 = vld [vmem:[%s1075_s26 + $0x60] sm:$0xff]  ;;  %v219_v35 = vld [vmem:[%s1075_s26 + $0x68] sm:$0xff]  ;;  %v212_v36 = vld [vmem:[%s1075_s26 + $0x30] sm:$0xff] }
  0x5f   : > { %v220_v37 = vld [vmem:[%s1075_s26 + $0x70] sm:$0xff]  ;;  %v213_v38 = vld [vmem:[%s1075_s26 + $0x38] sm:$0xff]  ;;  %v530_v40 = vld [vmem:[%s1177_s2] ss:$0 sm:$0xff]  ;;  %p835_p7 = pnand %p834_p3, %p828_p8 }
  0x60   : > { %v221_v39 = vld [vmem:[%s1075_s26 + $0x78] sm:$0xff] }
  0x61   : > { %637 = vmatpush3.bf16.msra.mxu0 %v634_v8  ;;  %668 = vmatpush3.bf16.msra.mxu1 %v634_v8 }
  0x62   : > { %639 = vmatprep.subr.bf16.mxu0 %v638_v13  ;;  %661 = vmatprep.subr.bf16.mxu1 %v638_v13 }
  0x65   : > { %641 = vmatpush3.bf16.msra.mxu0 %v638_v13  ;;  %669 = vmatpush3.bf16.msra.mxu1 %v638_v13 }
  0x66   : > { %643 = vmatprep.subr.bf16.mxu0 %v642_v16  ;;  %662 = vmatprep.subr.bf16.mxu1 %v642_v16 }
  0x69   : > { %645 = vmatpush3.bf16.msra.mxu0 %v642_v16  ;;  %670 = vmatpush3.bf16.msra.mxu1 %v642_v16 }
  0x6a   : > { %647 = vmatprep.subr.bf16.mxu0 %v646_v19  ;;  %663 = vmatprep.subr.bf16.mxu1 %v646_v19 }
  0x6d   : > { %649 = vmatpush3.bf16.msra.mxu0 %v646_v19  ;;  %671 = vmatpush3.bf16.msra.mxu1 %v646_v19 }
  0x6e   : > { %651 = vmatprep.subr.bf16.mxu0 %v650_v22  ;;  %664 = vmatprep.subr.bf16.mxu1 %v650_v22 }
  0x71   : > { %653 = vmatpush3.bf16.msra.mxu0 %v650_v22  ;;  %672 = vmatpush3.bf16.msra.mxu1 %v650_v22 }
  0x72   : > { %655 = vmatprep.subr.bf16.mxu0 %v654_v25  ;;  %665 = vmatprep.subr.bf16.mxu1 %v654_v25 }
  0x75   : > { %657 = vmatpush3.bf16.msra.mxu0 %v654_v25  ;;  %673 = vmatpush3.bf16.msra.mxu1 %v654_v25 }
  0x78   : > { %603 = vmatmul.mubr.f32.vlgmr.msra.gmra.mrb[0].mxu0 %v207_v26  ;;  %615 = vmatmul.mubr.f32.vlgmr.msra.gmra.mrb[0].mxu1 %v215_v27 }
  0x79   : > { %605 = vmatprep.mubr.f32.mxu0 %v208_v28  ;;  %617 = vmatprep.mubr.f32.mxu1 %v216_v29 }
  0x7c   : > { %606 = vmatmul.mubr.f32.gmra.mrb[2].mxu0 %v209_v30  ;;  %618 = vmatmul.mubr.f32.gmra.mrb[2].mxu1 %v217_v31 }
  0x7d   : > { %608 = vmatprep.mubr.f32.mxu0 %v210_v32  ;;  %620 = vmatprep.mubr.f32.mxu1 %v218_v33 }
  0x80   : > { %609 = vmatmul.mubr.f32.gmra.mrb[4].mxu0 %v211_v34  ;;  %621 = vmatmul.mubr.f32.gmra.mrb[4].mxu1 %v219_v35 }
  0x81   : > { %611 = vmatprep.mubr.f32.mxu0 %v212_v36  ;;  %623 = vmatprep.mubr.f32.mxu1 %v220_v37 }
  0x84   : > { %612 = vmatmul.mubr.f32.gmra.mrb[6].mxu0 %v213_v38  ;;  %624 = vmatmul.mubr.f32.gmra.mrb[6].mxu1 %v221_v39 }
 0x14b   : > { %v604_v41 = vpop.f32.mrb[0].mxu0  ;;  %v616_v42 = vpop.f32.mrb[0].mxu1 }
 0x14c   : > { %v317_v43 = vadd.f32 %v604_v41, %v530_v40  ;;  %v357_v44 = vadd.f32 %v616_v42, %v530_v40  ;;  %v311_v45 = vpop.f32.mrb[1].mxu0  ;;  %v351_v46 = vpop.f32.mrb[1].mxu1 }
 0x14d   : > { %v312_v47 = vadd.f32 %v530_v40, %v311_v45  ;;  %v352_v48 = vadd.f32 %v530_v40, %v351_v46 }
 0x14e   : > { %735 = vtanh.f32 %v317_v43 }
 0x14f   : > { %737 = vtanh.f32 %v357_v44  ;;  %v607_v49 = vpop.f32.mrb[2].mxu0  ;;  %v619_v50 = vpop.f32.mrb[2].mxu1 }
 0x150   : > { %739 = vtanh.f32 %v312_v47  ;;  %v327_v51 = vadd.f32 %v607_v49, %v530_v40  ;;  %v367_v52 = vadd.f32 %v619_v50, %v530_v40  ;;  %v321_v53 = vpop.f32.mrb[3].mxu0  ;;  %v361_v54 = vpop.f32.mrb[3].mxu1 }
 0x151   : > { %741 = vtanh.f32 %v352_v48  ;;  %v322_v55 = vadd.f32 %v530_v40, %v321_v53  ;;  %v362_v56 = vadd.f32 %v530_v40, %v361_v54 }
 0x152   : > { %743 = vtanh.f32 %v327_v51 }
 0x153   : > { %745 = vtanh.f32 %v367_v52  ;;  %v610_v57 = vpop.f32.mrb[4].mxu0  ;;  %v622_v58 = vpop.f32.mrb[4].mxu1 }
 0x154   : > { %747 = vtanh.f32 %v322_v55  ;;  %v337_v59 = vadd.f32 %v610_v57, %v530_v40  ;;  %v377_v60 = vadd.f32 %v622_v58, %v530_v40  ;;  %v331_v61 = vpop.f32.mrb[5].mxu0  ;;  %v371_v62 = vpop.f32.mrb[5].mxu1 }
 0x155   : > { %749 = vtanh.f32 %v362_v56  ;;  %v332_v63 = vadd.f32 %v530_v40, %v331_v61  ;;  %v372_v0 = vadd.f32 %v530_v40, %v371_v62 }
 0x156   : > { %751 = vtanh.f32 %v337_v59 }
 0x157   : > { %753 = vtanh.f32 %v377_v60  ;;  %v613_v1 = vpop.f32.mrb[6].mxu0  ;;  %v625_v2 = vpop.f32.mrb[6].mxu1 }
 0x158   : > { %v736_v3 = vpop.eup %735  ;;  %755 = vtanh.f32 %v332_v63  ;;  %v347_v4 = vadd.f32 %v613_v1, %v530_v40  ;;  %v387_v5 = vadd.f32 %v625_v2, %v530_v40  ;;  %v341_v6 = vpop.f32.mrb[7].mxu0 }
 0x159   : > { %v381_v7 = vpop.f32.mrb[7].mxu1  ;;  %v738_v8 = vpop.eup %737  ;;  %407 = vst [vmem:[%s1106_s8 + $0x8] sm:$0xff] %v736_v3  ;;  %757 = vtanh.f32 %v372_v0  ;;  %v342_v9 = vadd.f32 %v530_v40, %v341_v6 }
 0x15a   : > { %v382_v10 = vadd.f32 %v530_v40, %v381_v7  ;;  %v740_v11 = vpop.eup %739  ;;  %415 = vst [vmem:[%s1106_s8 + $0x48] sm:$0xff] %v738_v8  ;;  %759 = vtanh.f32 %v347_v4 }
 0x15b   : > { %v742_v12 = vpop.eup %741  ;;  %406 = vst [vmem:[%s1106_s8] sm:$0xff] %v740_v11  ;;  %761 = vtanh.f32 %v387_v5 }
 0x15c   : > { %v744_v13 = vpop.eup %743  ;;  %414 = vst [vmem:[%s1106_s8 + $0x40] sm:$0xff] %v742_v12  ;;  %763 = vtanh.f32 %v342_v9 }
 0x15d   : > { %v746_v14 = vpop.eup %745  ;;  %409 = vst [vmem:[%s1106_s8 + $0x18] sm:$0xff] %v744_v13  ;;  %765 = vtanh.f32 %v382_v10 }
 0x15e   : > { %v748_v15 = vpop.eup %747  ;;  %417 = vst [vmem:[%s1106_s8 + $0x58] sm:$0xff] %v746_v14 }
 0x15f   : > { %v750_v16 = vpop.eup %749  ;;  %408 = vst [vmem:[%s1106_s8 + $0x10] sm:$0xff] %v748_v15 }
 0x160   : > { %v752_v17 = vpop.eup %751  ;;  %416 = vst [vmem:[%s1106_s8 + $0x50] sm:$0xff] %v750_v16 }
 0x161   : > { %v754_v18 = vpop.eup %753  ;;  %411 = vst [vmem:[%s1106_s8 + $0x28] sm:$0xff] %v752_v17 }
 0x162   : > { %v756_v19 = vpop.eup %755  ;;  %419 = vst [vmem:[%s1106_s8 + $0x68] sm:$0xff] %v754_v18 }
 0x163   : > { %v758_v20 = vpop.eup %757  ;;  %410 = vst [vmem:[%s1106_s8 + $0x20] sm:$0xff] %v756_v19 }
 0x164   : > { %v760_v21 = vpop.eup %759  ;;  %418 = vst [vmem:[%s1106_s8 + $0x60] sm:$0xff] %v758_v20 }
 0x165   : > { %v762_v22 = vpop.eup %761  ;;  %413 = vst [vmem:[%s1106_s8 + $0x38] sm:$0xff] %v760_v21 }
 0x166   : > { %v764_v23 = vpop.eup %763  ;;  %421 = vst [vmem:[%s1106_s8 + $0x78] sm:$0xff] %v762_v22 }
 0x167   : > { %v766_v24 = vpop.eup %765  ;;  %412 = vst [vmem:[%s1106_s8 + $0x30] sm:$0xff] %v764_v23 }
 0x168   : > { %420 = vst [vmem:[%s1106_s8 + $0x70] sm:$0xff] %v766_v24 }
 0x169   : > { %838 = shalt.err (!%p835_p7)
}
 0x16a   : > { %s839_s30 = scalar_lea.hbm %s1126_s11, 2048  ;;  %s843_s10 = scalar_lea.hbm %s1178_s3, 4096 }
 0x16b   : > { %p840_p9 = scmp.ne.s32.totalorder %s1126_s11, %s839_s30  ;;  %p844_p5 = scmp.lt.u32.totalorder %s1126_s11, %s1178_s3 }
 0x16c   : > { %p845_p11 = scmp.lt.u32.totalorder %s843_s10, %s839_s30  ;;  %p847_p4 = scmp.lt.u32.totalorder %s839_s30, %s1126_s11 }
 0x16d   : > { %p841_p1 = pnand %p840_p9, %p1018_p12 }
 0x16e   : > { %p846_p2 = por %p845_p11, %p844_p5 }
 0x16f   : > { %p842_p0 = pneg %p841_p1 }
 0x170   : > { %p848_p6 = por %p847_p4, %p846_p2 }
 0x172   : > { %p849_p8 = pnand %p848_p6, %p842_p0 }
 0x174   : > { %852 = shalt.err (!%p849_p8)
}
 0x175   : > { %s902_s20 = smov 128   ;;  %s903_s8 = smov 8  }
 0x176   : > { %680 = dma.vmem_to_hbm [thread:$0]  (%p1018_p12), %s1128_s4, 2048, %s1126_s11, %s423_s16, %s902_s20, %s902_s20, %s903_s8  }
 0x177 PF: > { %s451_s9 = sand.u32 1, %s883_s12   ;;  %p1193_p10 = scmp.ne.s32.totalorder %s1183_s19, 0 }
 0x178   : > { %p1194_p13 = scmp.ge.s32.totalorder %s895_s15, 2  ;;  %s452_s25 = scalar_lea.sflag [#allocation4], %s451_s9 }
 0x17a   : > { %p691_p3 = pnand %p1194_p13, %p1193_p10 }
 0x17c   : > { %878 = dma.done.wait (!%p691_p3), %s452_s25, 2048  }
 0x17d   : > { %880 = vsyncadd (!%p691_p3), %s452_s25, 4294965248  ;;  %p17_p7 = scmp.ge.s32.totalorder %s980_s24, 4   ;;  %s1195_s12 = smov %s887_s13 }
 0x17e   : > { %s1196_s13 = smov %s891_s14  ;;  %s1197_s14 = smov %s1014_s17 }
 0x17f   : > { %s1198_s15 = smov %s980_s24  ;;  %19 = sbr.rel (!%p17_p7) target bundleno = 6 (0x6), region = 81 }
 0x186   :  { %457 = vsyncpa [#allocation3], 1 }
 0x187   :  { %459 = vsyncpa [#allocation3 + $0x1], 1 }
 0x188   :  { %460 = vsyncpa [#allocation6], 1 }
 0x189   :  { %461 = vsyncpa [#allocation4], 1 }
 0x18a   :  { %463 = vsyncpa [#allocation4 + $0x1], 1 }

</bundles_post_ra>
